<compile_context>
chip_gen: v6e
topology: v6e:2x2x1
jax: 0.10.0
libtpu: 0.0.40
codegen_flags: <defaults>
</compile_context>

<pallas_src>
import jax
import jax.numpy as jnp
from jax.experimental import pallas as pl
from jax.experimental.pallas import tpu as pltpu

EPS = 1e-6


def _round_up(v, m):
    return (v + m - 1) // m * m


# ------------- Path A: full weight resident in VMEM (single N tile) ---------

def _make_kernel_full(d_actual, d_padded, eps, matmul_dtype):
    need_mask = d_padded != d_actual

    def kernel(x_ref, a2_ref, b2_ref, wt_ref, bias_ref, o_ref):
        x = x_ref[...].astype(jnp.float32)               # (tm, Dp), LN math in f32
        a2 = a2_ref[...]                                 # (1, Dp)
        b2 = b2_ref[...]
        bias = bias_ref[...]

        # --- LayerNorm (torch: unbiased variance, divide by std + eps) ---
        # Padded lanes of x are zero, so the row sum only sees real features.
        mean = jnp.sum(x, axis=-1, keepdims=True) * (1.0 / d_actual)
        xc = x - mean
        if need_mask:
            lane = jax.lax.broadcasted_iota(jnp.int32, (1, d_padded), 1)
            xc = jnp.where(lane < d_actual, xc, 0.0)     # padded lanes back to 0
        var = jnp.sum(xc * xc, axis=-1, keepdims=True) * (1.0 / (d_actual - 1))
        inv = pl.reciprocal(jnp.sqrt(var) + eps, approx=True)   # EUP, off VALU
        normed = xc * (inv * a2) + b2                    # padded lanes stay 0

        # --- sublayer: dense projection on the MXU (bf16 in, f32 acc) ---
        sub = jnp.dot(normed.astype(matmul_dtype), wt_ref[...],
                      preferred_element_type=jnp.float32) + bias

        # --- dropout (eval mode = identity) + residual ---
        o_ref[...] = (x + sub).astype(o_ref.dtype)

    return kernel


# ------------- Path B: N-tiled weight + cached normed rows (large D) --------

def _make_kernel_ntiled(d_actual, d_padded, eps, matmul_dtype):
    need_mask = d_padded != d_actual

    def kernel(xrow_ref, xcol_ref, a2_ref, b2_ref, wt_ref, bias_ref, o_ref,
               normed_ref):
        j = pl.program_id(1)

        # LayerNorm once per row tile; reuse for every weight column block.
        @pl.when(j == 0)
        def _():
            x = xrow_ref[...].astype(jnp.float32)
            mean = jnp.sum(x, axis=-1, keepdims=True) * (1.0 / d_actual)
            xc = x - mean
            if need_mask:
                lane = jax.lax.broadcasted_iota(jnp.int32, (1, d_padded), 1)
                xc = jnp.where(lane < d_actual, xc, 0.0)
            var = jnp.sum(xc * xc, axis=-1, keepdims=True) * (1.0 / (d_actual - 1))
            inv = pl.reciprocal(jnp.sqrt(var) + eps, approx=True)
            normed_ref[...] = (xc * (inv * a2_ref[...])
                               + b2_ref[...]).astype(matmul_dtype)

        sub = jnp.dot(normed_ref[...], wt_ref[...],
                      preferred_element_type=jnp.float32) + bias_ref[...]
        o_ref[...] = (xcol_ref[...].astype(jnp.float32) + sub).astype(o_ref.dtype)

    return kernel


def sublayer_connection(x, a2, b2, w, bias, *, tm=None,
                        matmul_dtype=jnp.bfloat16, eps=EPS):
    """x: (B, S, D). Returns x + Dense(LayerNorm(x)) with eval-mode dropout."""
    B, S, D = x.shape
    assert D >= 2, "unbiased std needs D >= 2"
    M = B * S

    Dp = _round_up(D, 128)                    # lane-dense feature dim
    x_item = jnp.dtype(x.dtype).itemsize
    out_item = x_item
    w_item = jnp.dtype(matmul_dtype).itemsize

    # Per-generation VMEM budget (v5e/v6e: 128 MiB, v7x: 64 MiB per core),
    # leaving headroom for Mosaic internal scratch / pipeline bookkeeping.
    try:
        vmem_cap = pltpu.get_tpu_info().vmem_capacity_bytes
    except Exception:  # pragma: no cover - conservative fallback
        vmem_cap = 64 << 20
    vmem_ceiling = max(vmem_cap - (12 << 20), vmem_cap * 3 // 4)

    # Weight residency: keep the whole (Dp, Dp) weight in VMEM while it is a
    # small fraction of the budget; otherwise tile the output columns (e.g.
    # d_model >= ~2k on v7x) and cache the normalized rows instead.
    full_weight_bytes = Dp * Dp * w_item
    if full_weight_bytes <= vmem_ceiling // 3:
        tn = Dp
    else:
        tn = 512 if Dp % 512 == 0 else (256 if Dp % 256 == 0 else 128)
    n_tiles = Dp // tn

    # Adaptive row tile: large tiles amortize the ~0.35us per-grid-step cost
    # in the mem-bound (small-D) regime.
    if tm is None:
        tm = 1024 if Dp <= 512 else (512 if Dp <= 1024 else 256)
    tm = min(tm, _round_up(M, 8))

    def footprint(tm_):
        if n_tiles == 1:
            return (2 * tm_ * Dp * x_item          # x tiles (double buffered)
                    + 2 * tm_ * Dp * out_item      # out tiles (double buffered)
                    + 1 * Dp * Dp * w_item         # resident weight (1 buffer)
                    + 4 * Dp * 4)                  # a_2 / b_2 / bias
        return (2 * tm_ * Dp * x_item              # x row tile (LN input)
                + 2 * tm_ * tn * x_item            # x column tile (residual)
                + 2 * tm_ * tn * out_item          # out tiles
                + 2 * Dp * tn * w_item             # weight column blocks
                + tm_ * Dp * w_item                # cached normed rows (scratch)
                + 4 * Dp * 4)                      # a_2 / b_2 / bias

    while footprint(tm) > vmem_ceiling and tm > 8:
        tm = max(8, _round_up(tm // 2, 8))

    Mp = _round_up(M, tm)
    padded = (Mp, Dp) != (M, D)

    # x stays in its native dtype; pad only when the shape is genuinely ragged
    # (pad and the final slice are each a full HBM round trip).
    x2 = x.reshape(M, D)
    if padded:
        x2 = jnp.pad(x2, ((0, Mp - M), (0, Dp - D)))

    a2p = a2.astype(jnp.float32).reshape(1, D)
    b2p = b2.astype(jnp.float32).reshape(1, D)
    biasp = bias.astype(jnp.float32).reshape(1, D)
    # Cast the weight to the matmul dtype FIRST, then transpose / pad once.
    # For a static per-layer weight this prep const-folds / hoists under jit.
    wt = w.astype(matmul_dtype).T
    if Dp != D:
        pad_d = Dp - D
        a2p = jnp.pad(a2p, ((0, 0), (0, pad_d)))
        b2p = jnp.pad(b2p, ((0, 0), (0, pad_d)))
        biasp = jnp.pad(biasp, ((0, 0), (0, pad_d)))
        wt = jnp.pad(wt, ((0, pad_d), (0, pad_d)))

    vmem_bytes = int(min(max(footprint(tm) * 3 // 2 + (1 << 20), 8 << 20),
                         vmem_ceiling))

    if n_tiles == 1:
        out = pl.pallas_call(
            _make_kernel_full(D, Dp, eps, matmul_dtype),
            out_shape=jax.ShapeDtypeStruct((Mp, Dp), x.dtype),
            grid_spec=pltpu.PrefetchScalarGridSpec(
                num_scalar_prefetch=0,
                grid=(Mp // tm,),
                in_specs=[
                    pl.BlockSpec((tm, Dp), lambda i: (i, 0)),        # x rows
                    pl.BlockSpec((1, Dp), lambda i: (0, 0),
                                 pipeline_mode=pl.Buffered(1)),      # a_2
                    pl.BlockSpec((1, Dp), lambda i: (0, 0),
                                 pipeline_mode=pl.Buffered(1)),      # b_2
                    pl.BlockSpec((Dp, Dp), lambda i: (0, 0),
                                 pipeline_mode=pl.Buffered(1)),      # W^T
                    pl.BlockSpec((1, Dp), lambda i: (0, 0),
                                 pipeline_mode=pl.Buffered(1)),      # bias
                ],
                out_specs=pl.BlockSpec((tm, Dp), lambda i: (i, 0)),
            ),
            compiler_params=pltpu.CompilerParams(
                dimension_semantics=("parallel",),
                vmem_limit_bytes=vmem_bytes),
        )(x2, a2p, b2p, wt, biasp)
    else:
        out = pl.pallas_call(
            _make_kernel_ntiled(D, Dp, eps, matmul_dtype),
            out_shape=jax.ShapeDtypeStruct((Mp, Dp), x.dtype),
            grid_spec=pltpu.PrefetchScalarGridSpec(
                num_scalar_prefetch=0,
                grid=(Mp // tm, n_tiles),
                in_specs=[
                    pl.BlockSpec((tm, Dp), lambda i, j: (i, 0)),     # x row (LN)
                    pl.BlockSpec((tm, tn), lambda i, j: (i, j)),     # x col (residual)
                    pl.BlockSpec((1, Dp), lambda i, j: (0, 0),
                                 pipeline_mode=pl.Buffered(1)),      # a_2
                    pl.BlockSpec((1, Dp), lambda i, j: (0, 0),
                                 pipeline_mode=pl.Buffered(1)),      # b_2
                    pl.BlockSpec((Dp, tn), lambda i, j: (0, j)),     # W^T col block
                    pl.BlockSpec((1, tn), lambda i, j: (0, j)),      # bias col block
                ],
                out_specs=pl.BlockSpec((tm, tn), lambda i, j: (i, j)),
                scratch_shapes=[pltpu.VMEM((tm, Dp), matmul_dtype)],
            ),
            compiler_params=pltpu.CompilerParams(
                dimension_semantics=("parallel", "arbitrary"),
                vmem_limit_bytes=vmem_bytes),
        )(x2, x2, a2p, b2p, wt, biasp)

    if padded:
        out = out[:M, :D]
    return out.reshape(B, S, D)


def reference(x, a2, b2, w, bias, *, matmul_dtype=jnp.bfloat16, eps=EPS):
    x32 = x.astype(jnp.float32)
    d = x.shape[-1]
    mean = jnp.mean(x32, axis=-1, keepdims=True)
    xc = x32 - mean
    var_unb = jnp.sum(xc * xc, axis=-1, keepdims=True) / (d - 1)
    std = jnp.sqrt(var_unb)
    normed = a2 * xc / (std + eps) + b2
    # Mirror the kernel's bf16 MXU operands (f32 accumulation).
    sub = jnp.dot(normed.astype(matmul_dtype), w.T.astype(matmul_dtype),
                  preferred_element_type=jnp.float32) + bias
    return (x32 + sub).astype(x.dtype)


if __name__ == "__main__":
    key = jax.random.PRNGKey(0)
    B, S, D = 2, 8, 32  # batch, seq, d_model (== "size" of SublayerConnection)

    kx, kw, kb = jax.random.split(key, 3)
    x = jax.random.normal(kx, (B, S, D), dtype=jnp.float32)

    # LayerNorm params (same deterministic init as nn.Module.__init__)
    a2 = jnp.ones((D,), jnp.float32)
    b2 = jnp.zeros((D,), jnp.float32)

    # Representative dense sublayer params (deterministic synthetic init)
    w = jax.random.normal(kw, (D, D), dtype=jnp.float32) * 0.05
    bias = jax.random.normal(kb, (D,), dtype=jnp.float32) * 0.01

    out = sublayer_connection(x, a2, b2, w, bias)
    out = jax.block_until_ready(out)

    ref = reference(x, a2, b2, w, bias)
    assert out.shape == (B, S, D)
    # Tolerance covers the approximate (EUP) reciprocal and bf16 MXU operands.
    assert jnp.allclose(out, ref, atol=5e-3, rtol=5e-3), "mismatch vs reference"

    print("KERNEL_OK")
</pallas_src>

<mosaic_0001>
module attributes {stable_mosaic.version = 11 : i64} {
  func.func @kernel(%arg0: i32, %arg1: memref<16x128xf32, #tpu.memory_space<vmem>>, %arg2: memref<1x128xf32, #tpu.memory_space<vmem>>, %arg3: memref<1x128xf32, #tpu.memory_space<vmem>>, %arg4: memref<128x128xbf16, #tpu.memory_space<vmem>>, %arg5: memref<1x128xf32, #tpu.memory_space<vmem>>, %arg6: memref<16x128xf32, #tpu.memory_space<vmem>>) attributes {dimension_semantics = [#tpu.dimension_semantics<parallel>], iteration_bounds = array<i64: 1>, scalar_prefetch = 0 : i64, scratch_operands = 0 : i64, tpu.core_type = #tpu.core_type<tc>, window_params = [{transform_indices = @transform_0, window_bounds = array<i64: 16, 128>}, {pipeline_mode = #tpu.pipeline_mode<synchronous>, transform_indices = @transform_1, window_bounds = array<i64: 1, 128>}, {pipeline_mode = #tpu.pipeline_mode<synchronous>, transform_indices = @transform_2, window_bounds = array<i64: 1, 128>}, {pipeline_mode = #tpu.pipeline_mode<synchronous>, transform_indices = @transform_3, window_bounds = array<i64: 128, 128>}, {pipeline_mode = #tpu.pipeline_mode<synchronous>, transform_indices = @transform_4, window_bounds = array<i64: 1, 128>}, {transform_indices = @transform_5, window_bounds = array<i64: 16, 128>}]} {
    %c0 = arith.constant 0 : index
    %c0_0 = arith.constant 0 : index
    %0 = vector.load %arg1[%c0, %c0_0] : memref<16x128xf32, #tpu.memory_space<vmem>>, vector<16x128xf32>
    %c0_1 = arith.constant 0 : index
    %c0_2 = arith.constant 0 : index
    %1 = vector.load %arg2[%c0_1, %c0_2] : memref<1x128xf32, #tpu.memory_space<vmem>>, vector<1x128xf32>
    %c0_3 = arith.constant 0 : index
    %c0_4 = arith.constant 0 : index
    %2 = vector.load %arg3[%c0_3, %c0_4] : memref<1x128xf32, #tpu.memory_space<vmem>>, vector<1x128xf32>
    %c0_5 = arith.constant 0 : index
    %c0_6 = arith.constant 0 : index
    %3 = vector.load %arg5[%c0_5, %c0_6] : memref<1x128xf32, #tpu.memory_space<vmem>>, vector<1x128xf32>
    %cst = arith.constant dense<0.000000e+00> : vector<16xf32>
    %4 = vector.multi_reduction <add>, %0, %cst [1] : vector<16x128xf32> to vector<16xf32>
    %5 = vector.shape_cast %4 : vector<16xf32> to vector<16x1xf32>
    %cst_7 = arith.constant 3.125000e-02 : f32
    %6 = vector.broadcast %cst_7 : f32 to vector<16x1xf32>
    %7 = arith.mulf %5, %6 : vector<16x1xf32>
    %8 = vector.broadcast %7 : vector<16x1xf32> to vector<16x128xf32>
    %9 = arith.subf %0, %8 : vector<16x128xf32>
    %10 = tpu.iota {dimensions = array<i32: 1>} : vector<1x128xi32>
    %c32_i32 = arith.constant 32 : i32
    %11 = vector.broadcast %c32_i32 : i32 to vector<1x128xi32>
    %12 = arith.cmpi slt, %10, %11 : vector<1x128xi32>
    %cst_8 = arith.constant 0.000000e+00 : f32
    %13 = vector.shape_cast %12 : vector<1x128xi1> to vector<1x128xi1>
    %14 = vector.broadcast %13 : vector<1x128xi1> to vector<16x128xi1>
    %15 = vector.broadcast %cst_8 : f32 to vector<16x128xf32>
    %16 = arith.select %14, %9, %15 : vector<16x128xi1>, vector<16x128xf32>
    %17 = arith.mulf %16, %16 : vector<16x128xf32>
    %cst_9 = arith.constant dense<0.000000e+00> : vector<16xf32>
    %18 = vector.multi_reduction <add>, %17, %cst_9 [1] : vector<16x128xf32> to vector<16xf32>
    %19 = vector.shape_cast %18 : vector<16xf32> to vector<16x1xf32>
    %cst_10 = arith.constant 0.0322580636 : f32
    %20 = vector.broadcast %cst_10 : f32 to vector<16x1xf32>
    %21 = arith.mulf %19, %20 : vector<16x1xf32>
    %22 = math.sqrt %21 : vector<16x1xf32>
    %cst_11 = arith.constant 9.99999997E-7 : f32
    %23 = vector.broadcast %cst_11 : f32 to vector<16x1xf32>
    %24 = arith.addf %22, %23 : vector<16x1xf32>
    %25 = tpu.reciprocal %24 {approx = true} : vector<16x1xf32> -> vector<16x1xf32>
    %26 = vector.broadcast %25 : vector<16x1xf32> to vector<16x128xf32>
    %27 = vector.broadcast %1 : vector<1x128xf32> to vector<16x128xf32>
    %28 = arith.mulf %26, %27 : vector<16x128xf32>
    %29 = arith.mulf %16, %28 : vector<16x128xf32>
    %30 = vector.broadcast %2 : vector<1x128xf32> to vector<16x128xf32>
    %31 = arith.addf %29, %30 : vector<16x128xf32>
    %32 = arith.truncf %31 : vector<16x128xf32> to vector<16x128xbf16>
    %c0_12 = arith.constant 0 : index
    %c0_13 = arith.constant 0 : index
    %33 = vector.load %arg4[%c0_12, %c0_13] : memref<128x128xbf16, #tpu.memory_space<vmem>>, vector<128x128xbf16>
    %cst_14 = arith.constant dense<0.000000e+00> : vector<16x128xf32>
    %34 = tpu.matmul %32, %33, %cst_14 {dimension_numbers = #tpu.dot_dimension_numbers<[1], [0], [0], [1], [0, 0, 1, 1], [], []>} : vector<16x128xbf16>, vector<128x128xbf16>, vector<16x128xf32> -> vector<16x128xf32>
    %35 = vector.broadcast %3 : vector<1x128xf32> to vector<16x128xf32>
    %36 = arith.addf %34, %35 : vector<16x128xf32>
    %37 = arith.addf %0, %36 : vector<16x128xf32>
    %c0_15 = arith.constant 0 : index
    %c0_16 = arith.constant 0 : index
    %38 = vector.load %arg6[%c0_15, %c0_16] : memref<16x128xf32, #tpu.memory_space<vmem>>, vector<16x128xf32>
    tpu.vector_store %arg6[%c0_15, %c0_16], %37 {strides = array<i32>} : memref<16x128xf32, #tpu.memory_space<vmem>>, vector<16x128xf32>,
    return
  }
  func.func @transform_0(%arg0: i32) -> (i32, i32) {
    %c0_i32 = arith.constant 0 : i32
    %c0_i32_0 = arith.constant 0 : i32
    return %arg0, %c0_i32 : i32, i32
  }
  func.func @transform_1(%arg0: i32) -> (i32, i32) {
    %c0_i32 = arith.constant 0 : i32
    %c0_i32_0 = arith.constant 0 : i32
    %c0_i32_1 = arith.constant 0 : i32
    return %c0_i32, %c0_i32_0 : i32, i32
  }
  func.func @transform_2(%arg0: i32) -> (i32, i32) {
    %c0_i32 = arith.constant 0 : i32
    %c0_i32_0 = arith.constant 0 : i32
    %c0_i32_1 = arith.constant 0 : i32
    return %c0_i32, %c0_i32_0 : i32, i32
  }
  func.func @transform_3(%arg0: i32) -> (i32, i32) {
    %c0_i32 = arith.constant 0 : i32
    %c0_i32_0 = arith.constant 0 : i32
    %c0_i32_1 = arith.constant 0 : i32
    return %c0_i32, %c0_i32_0 : i32, i32
  }
  func.func @transform_4(%arg0: i32) -> (i32, i32) {
    %c0_i32 = arith.constant 0 : i32
    %c0_i32_0 = arith.constant 0 : i32
    %c0_i32_1 = arith.constant 0 : i32
    return %c0_i32, %c0_i32_0 : i32, i32
  }
  func.func @transform_5(%arg0: i32) -> (i32, i32) {
    %c0_i32 = arith.constant 0 : i32
    %c0_i32_0 = arith.constant 0 : i32
    return %arg0, %c0_i32 : i32, i32
  }
}

</mosaic_0001>

<bundles_post_ra>
// kernel: tpu_custom_call.1
= control target key start
LH: loop header
LB: loop body
LE: loop exit
PB: predicated region body
PF: predicated region fallthrough
CT: control target
= control target key end

     0   :  { %10 = vsyncpa [#allocation3], 0  ;;  %s457_s0 = inlined_call_operand.hbm [shape: f32[16,128], index: 0, kind: input, shape index: {}]   ;;  %s458_s1 = inlined_call_operand.vmem [shape: f32[1,128], index: 1, kind: input, shape index: {}]   ;;  %s459_s2 = inlined_call_operand.vmem [shape: f32[1,128], index: 2, kind: input, shape index: {}]   ;;  %s460_s3 = inlined_call_operand.hbm [shape: bf16[128,128], index: 3, kind: input, shape index: {}]   ;;  %s461_s4 = inlined_call_operand.vmem [shape: f32[1,128], index: 4, kind: input, shape index: {}]   ;;  %s462_s5 = inlined_call_operand.hbm [shape: f32[16,128], index: 5, kind: output, shape index: {}]  }
   0x1   :  { %11 = vsyncpa [#allocation6], 0 }
   0x2   :  { %12 = vsyncpa [#allocation4], 0  ;;  %s379_s18 = smov [#allocation2]  }
   0x3   :  { %s18_s19 = sshll.u32 %s379_s18, 4  ;;  %s19_s19 = int_to_ptr.vmem [resolvable:$true] %s18_s19 }
   0x4   :  { %s321_s20 = scalar_lea.vmem %s19_s19, 256  ;;  %p326_p1 = scmp.lt.s32.totalorder %s19_s19, %s19_s19 }
   0x5   :  { %p322_p0 = scmp.ne.s32.totalorder %s19_s19, %s321_s20  ;;  %p327_p2 = scmp.lt.s32.totalorder %s321_s20, %s321_s20 }
   0x7   :  { %p328_p3 = por %p327_p2, %p326_p1 }
   0x9   :  { %p329_p4 = pnand %p328_p3, %p322_p0 }
   0xb   :  { %332 = shalt.err (!%p329_p4)
}
   0xc   :  { %s380_s21 = smov 128   ;;  %s381_s22 = smov 8  }
   0xd   :  { %24 = dma.hbm_to_vmem [thread:$0]  %s457_s0, 256, %s19_s19, [#allocation3], %s380_s21, %s380_s21, %s381_s22  }
   0xe   :  { %s382_s25 = smov [#allocation5]  }
   0xf   :  { %s34_s26 = sshll.u32 %s382_s25, 4  ;;  %s35_s26 = int_to_ptr.vmem [resolvable:$true] %s34_s26 }
  0x10   :  { %s341_s27 = scalar_lea.vmem %s35_s26, 1024  ;;  %p346_p6 = scmp.lt.s32.totalorder %s35_s26, %s35_s26 }
  0x11   :  { %p342_p5 = scmp.ne.s32.totalorder %s35_s26, %s341_s27  ;;  %p347_p7 = scmp.lt.s32.totalorder %s341_s27, %s341_s27 }
  0x13   :  { %p348_p8 = por %p347_p7, %p346_p6 }
  0x15   :  { %p349_p9 = pnand %p348_p8, %p342_p5 }
  0x17   :  { %352 = shalt.err (!%p349_p9)
}
  0x18   :  { %s383_s28 = smov 64   ;;  %s384_s29 = smov 4  }
  0x19   :  { %40 = dma.hbm_to_vmem [thread:$0]  %s460_s3, 1024, %s35_s26, [#allocation6], %s383_s28, %s383_s28, %s384_s29  }
  0x1a   :  { %373 = dma.done.wait [#allocation3], 256  }
  0x1b   :  { %374 = vsyncadd [#allocation3], 4294967040 }
  0x1c   :  { %375 = dma.done.wait [#allocation6], 1024  }
  0x1d   :  { %376 = vsyncadd [#allocation6], 4294966272  ;;  %v427_v0 = vld [vmem:[#allocation2] sm:$0xff]  ;;  %v429_v1 = vld [vmem:[#allocation2 + $0x8] sm:$0xff]  ;;  %v63_v2 = vlaneseq  ;;  %v385_v15 = vmov 0.0   ;;  %vm386_vm1 = vmmov 0  }
  0x1e   :  { %55 = vadd.xlane.f32.xlu0 %v427_v0  ;;  %v297_v14 = vld [vmem:[#allocation5 + $0x38] sm:$0xff]   ;;  %268 = vmatprep.subr.bf16.mxu0 %v385_v15  ;;  %v298_v16 = vld [vmem:[#allocation5 + $0x30] sm:$0xff]   ;;  %v299_v17 = vld [vmem:[#allocation5 + $0x28] sm:$0xff]  }
  0x1f   :  { %v64_v3 = vand.u32 127, %v63_v2  ;;  %269 = vmatpush3.bf16.msra.mxu0 %v297_v14  ;;  %v300_v18 = vld [vmem:[#allocation5 + $0x20] sm:$0xff]   ;;  %284 = vmatprep.mubr.msk.bf16.mxu0 %vm386_vm1, %v385_v15  ;;  %v301_v19 = vld [vmem:[#allocation5 + $0x18] sm:$0xff]   ;;  %v302_v20 = vld [vmem:[#allocation5 + $0x10] sm:$0xff]  }
  0x20   :  { %270 = vmatprep.subr.bf16.mxu0 %v385_v15  ;;  %v303_v21 = vld [vmem:[#allocation5 + $0x8] sm:$0xff]   ;;  %v304_v22 = vld [vmem:[#allocation5] sm:$0xff]   ;;  %v248_v39 = vld [vmem:[%s458_s1] ss:$0 sm:$0xff]  ;;  %s387_s1 = smov [#allocation7]  }
  0x21   :  { %vm65_vm0 = vcmp.lt.s32.totalorder %v64_v3, 32  ;;  %v249_v45 = vld [vmem:[%s459_s2] ss:$0 sm:$0xff]  ;;  %s235_s11 = sshll.u32 %s387_s1, 4  ;;  %s236_s11 = int_to_ptr.vmem [resolvable:$true] %s235_s11 }
  0x22   :  { %57 = vadd.xlane.f32.xlu0 %v429_v1  ;;  %v250_v50 = vld [vmem:[%s461_s4] ss:$0 sm:$0xff]  ;;  %s353_s2 = scalar_lea.vmem %s236_s11, 256  ;;  %p358_p11 = scmp.lt.s32.totalorder %s236_s11, %s236_s11 }
  0x23   :  { %271 = vmatpush3.bf16.msra.mxu0 %v298_v16  ;;  %p354_p10 = scmp.ne.s32.totalorder %s236_s11, %s353_s2  ;;  %p359_p12 = scmp.lt.s32.totalorder %s353_s2, %s353_s2 }
  0x24   :  { %272 = vmatprep.subr.bf16.mxu0 %v385_v15 }
  0x25   :  { %p360_p13 = por %p359_p12, %p358_p11 }
  0x27   :  { %273 = vmatpush3.bf16.msra.mxu0 %v299_v17  ;;  %p361_p0 = pnand %p360_p13, %p354_p10 }
  0x28   :  { %274 = vmatprep.subr.bf16.mxu0 %v385_v15 }
  0x2b   :  { %275 = vmatpush3.bf16.msra.mxu0 %v300_v18 }
  0x2c   :  { %276 = vmatprep.subr.bf16.mxu0 %v385_v15 }
  0x2f   :  { %277 = vmatpush3.bf16.msra.mxu0 %v301_v19 }
  0x30   :  { %278 = vmatprep.subr.bf16.mxu0 %v385_v15 }
  0x33   :  { %279 = vmatpush3.bf16.msra.mxu0 %v302_v20 }
  0x34   :  { %280 = vmatprep.subr.bf16.mxu0 %v385_v15 }
  0x37   :  { %281 = vmatpush3.bf16.msra.mxu0 %v303_v21 }
  0x38   :  { %282 = vmatprep.subr.bf16.mxu0 %v385_v15 }
  0x3b   :  { %283 = vmatpush3.bf16.msra.mxu0 %v304_v22 }
  0xa7   :  { %v56_v4 = vpop.xlane.xlu0 %55 }
  0xa8   :  { %v59_v5 = vmul.f32 0.03125, %v56_v4 }
  0xaa   :  { %v61_v6 = vsub.f32 %v427_v0, %v59_v5 }
  0xab   :  { %v58_v7 = vpop.xlane.xlu0 %57 }
  0xac   :  { %v60_v8 = vmul.f32 0.03125, %v58_v7  ;;  %v434_v9 = vsel %vm65_vm0, %v61_v6, 0.0 }
  0xad   :  { %v70_v10 = vmul.f32 %v434_v9, %v434_v9 }
  0xae   :  { %v62_v11 = vsub.f32 %v429_v1, %v60_v8 }
  0xaf   :  { %72 = vadd.xlane.f32.xlu1 %v70_v10 }
  0xb0   :  { %v69_v12 = vsel %vm65_vm0, %v62_v11, 0.0 }
  0xb1   :  { %v71_v13 = vmul.f32 %v69_v12, %v69_v12 }
  0xb3   :  { %74 = vadd.xlane.f32.xlu1 %v71_v13 }
 0x138   :  { %v73_v23 = vpop.xlane.xlu1 %72 }
 0x139   :  { %v76_v24 = vmul.f32 0.032258064, %v73_v23 }
 0x13b   :  { %305 = vrsqrt.f32 %v76_v24  ;;  %vm80_vm2 = vcmp.eq.f32.partialorder %v76_v24, inf  ;;  %v83_v29 = vand.u32 2147483648, %v76_v24  ;;  %vm82_vm3 = vcmp.eq.f32.partialorder %v76_v24, 0.0 }
 0x13c   :  { %v75_v25 = vpop.xlane.xlu1 %74 }
 0x13d   :  { %v77_v26 = vmul.f32 0.032258064, %v75_v25 }
 0x13f   :  { %307 = vrsqrt.f32 %v77_v26  ;;  %vm87_vm4 = vcmp.eq.f32.partialorder %v77_v26, inf  ;;  %v90_v35 = vand.u32 2147483648, %v77_v26  ;;  %vm89_vm5 = vcmp.eq.f32.partialorder %v77_v26, 0.0 }
 0x148   :  { %v306_v27 = vpop.eup %305 }
 0x149   :  { %v79_v28 = vmul.f32 %v306_v27, %v76_v24 }
 0x14b   :  { %v81_v30 = vsel %vm80_vm2, %v76_v24, %v79_v28 }
 0x14c   :  { %v308_v31 = vpop.eup %307  ;;  %v84_v32 = vsel %vm82_vm3, %v83_v29, %v81_v30 }
 0x14d   :  { %v92_v33 = vadd.f32 1e-06, %v84_v32  ;;  %v86_v34 = vmul.f32 %v308_v31, %v77_v26 }
 0x14f   :  { %309 = vrcp.f32 %v92_v33  ;;  %v88_v36 = vsel %vm87_vm4, %v77_v26, %v86_v34 }
 0x150   :  { %v91_v37 = vsel %vm89_vm5, %v90_v35, %v88_v36 }
 0x151   :  { %v93_v38 = vadd.f32 1e-06, %v91_v37 }
 0x153   :  { %311 = vrcp.f32 %v93_v38 }
 0x15c   :  { %v310_v40 = vpop.eup %309 }
 0x15d   :  { %v102_v41 = vmul.f32 %v310_v40, %v248_v39 }
 0x15f   :  { %v104_v44 = vmul.f32 %v102_v41, %v434_v9 }
 0x160   :  { %v312_v42 = vpop.eup %311 }
 0x161   :  { %v103_v43 = vmul.f32 %v312_v42, %v248_v39  ;;  %v112_v47 = vadd.f32 %v249_v45, %v104_v44 }
 0x163   :  { %v105_v46 = vmul.f32 %v103_v43, %v69_v12 }
 0x165   :  { %v113_v48 = vadd.f32 %v249_v45, %v105_v46 }
 0x167   :  { %v114_v49 = vpack.c.bf16 %v113_v48, %v112_v47 }
 0x169   :  { %285 = vmatmul.mubr.bf16.vlgmr.msra.gmra.mxu0 %v114_v49 }
 0x229   :  { %v219_v51 = vpop.f32.mrf.mxu0 }
 0x22a   :  { %v220_v52 = vadd.f32 %v250_v50, %v219_v51 }
 0x22b   :  { %v286_v53 = vpop.f32.mrf.mxu0 }
 0x22c   :  { %v226_v54 = vadd.f32 %v220_v52, %v427_v0 }
 0x22d   :  { %v222_v55 = vpop.f32.mrf.mxu0 }
 0x22e   :  { %228 = vst [vmem:[#allocation7] sm:$0xff] %v226_v54  ;;  %v223_v56 = vadd.f32 %v250_v50, %v222_v55 }
 0x22f   :  { %v287_v57 = vpop.f32.mrf.mxu0 }
 0x230   :  { %v227_v58 = vadd.f32 %v223_v56, %v429_v1 }
 0x232   :  { %229 = vst [vmem:[#allocation7 + $0x8] sm:$0xff] %v227_v58 }
 0x233   :  { %364 = shalt.err (!%p361_p0)
}
 0x234   :  { %241 = dma.vmem_to_hbm [thread:$0]  %s236_s11, 256, %s462_s5, [#allocation4], %s380_s21, %s380_s21, %s381_s22  }
 0x235   :  { %377 = dma.done.wait [#allocation4], 256  }
 0x236   :  { %378 = vsyncadd [#allocation4], 4294967040 }
 0x237   :  { %245 = vsyncpa [#allocation3], 1 }
 0x238   :  { %246 = vsyncpa [#allocation6], 1 }
 0x239   :  { %247 = vsyncpa [#allocation4], 1 }

</bundles_post_ra>
